<compile_context>
chip_gen: v7x
topology: tpu7x:2x2x1
jax: 0.10.0
libtpu: 0.0.40
codegen_flags: <defaults>
</compile_context>

<pallas_src>
import jax
import jax.numpy as jnp
from jax.experimental import pallas as pl
from jax.experimental.pallas import tpu as pltpu


LANES = 128                           # lane width: multiple of 128 -> unmasked vst
TILE_ROWS = 4096                      # (4096, 128) f32 = 2 MiB streaming block
SINGLE_BLOCK_MAX_ROWS = 4096          # slab <= 2 MiB -> whole-array (no-grid) call
FUSED_VMEM_BUDGET = 8 * 1024 * 1024   # 4 in + 4 out resident slabs for the fused path


def _round_up(v, m):
    return (v + m - 1) // m * m


def _elu_scaled(v, alpha):
    """ELU_alpha(v) where v has already been scaled/shifted (v = t*2 - 1)."""
    # Clamp the exp argument so the unselected branch never overflows.
    neg = alpha * (jnp.exp(jnp.minimum(v, 0.0)) - 1.0)
    return jnp.where(v > 0.0, v, neg)


def _fused_elu_kernel(x_ref, y_ref, z_ref, w_ref,
                      ox_ref, oy_ref, oz_ref, ow_ref):
    ox_ref[...] = _elu_scaled(x_ref[...] * 2.0 - 1.0, 1.0)
    oy_ref[...] = _elu_scaled(y_ref[...] * 2.0 - 1.0, 1.0)
    oz_ref[...] = _elu_scaled(z_ref[...] * 2.0 - 1.0, 1.3)
    ow_ref[...] = _elu_scaled(w_ref[...] * 2.0 - 1.0, 1.3)


def _make_elu_kernel(alpha):
    def kernel(t_ref, o_ref):
        o_ref[...] = _elu_scaled(t_ref[...] * 2.0 - 1.0, alpha)
    return kernel


def _cost(n_elems):
    # Per element: ~6 VPU flops, 1 transcendental, 4B read + 4B write.
    return pl.CostEstimate(flops=6 * n_elems, transcendentals=n_elems,
                           bytes_accessed=8 * n_elems)


def _to_slab(t):
    """Flatten + minimally zero-pad to a lane-dense (rows, 128) f32 slab."""
    t = jnp.asarray(t, jnp.float32)
    n = int(t.size)
    rows = max(_round_up(pl.cdiv(n, LANES), 8), 8)
    pad = rows * LANES - n
    flat = t.reshape(-1)
    if pad:
        flat = jnp.pad(flat, (0, pad))
    return flat.reshape(rows, LANES), n


def _from_slab(slab, n, shape):
    return slab.reshape(-1)[:n].reshape(shape)


def _elu_one_tensor(slab, n, shape, alpha):
    """Per-tensor path: whole-array call if small, streamed 1-D grid if large."""
    rows = slab.shape[0]
    kernel = _make_elu_kernel(alpha)
    if rows <= SINGLE_BLOCK_MAX_ROWS:
        out = pl.pallas_call(
            kernel,
            out_shape=jax.ShapeDtypeStruct(slab.shape, jnp.float32),
            cost_estimate=_cost(n),
        )(slab)
    else:
        rows_p = _round_up(rows, TILE_ROWS)
        if rows_p != rows:
            slab = jnp.pad(slab, ((0, rows_p - rows), (0, 0)))
        out = pl.pallas_call(
            kernel,
            out_shape=jax.ShapeDtypeStruct((rows_p, LANES), jnp.float32),
            grid=(rows_p // TILE_ROWS,),
            in_specs=[pl.BlockSpec((TILE_ROWS, LANES), lambda i: (i, 0))],
            out_specs=pl.BlockSpec((TILE_ROWS, LANES), lambda i: (i, 0)),
            compiler_params=pltpu.CompilerParams(
                dimension_semantics=("parallel",),
                vmem_limit_bytes=32 * 1024 * 1024,
            ),
            cost_estimate=_cost(n),
        )(slab)
    return _from_slab(out, n, shape)


def model_forward(x, y, z, w):
    tensors = (x, y, z, w)
    alphas = (1.0, 1.0, 1.3, 1.3)
    shapes = [t.shape for t in tensors]

    slabs, ns = [], []
    for t in tensors:
        s, n = _to_slab(t)
        slabs.append(s)
        ns.append(n)

    # in + out f32 footprint if everything sits resident in VMEM for one fused call.
    fused_bytes = 2 * 4 * sum(int(s.size) for s in slabs)
    if fused_bytes <= FUSED_VMEM_BUDGET:
        total = sum(ns)
        outs = pl.pallas_call(
            _fused_elu_kernel,
            out_shape=tuple(jax.ShapeDtypeStruct(s.shape, jnp.float32) for s in slabs),
            cost_estimate=_cost(total),
        )(*slabs)
        return tuple(_from_slab(o, n, sh) for o, n, sh in zip(outs, ns, shapes))

    # Large inputs: one call per tensor -> uniform per-step work, safe "parallel" grid.
    return tuple(_elu_one_tensor(s, n, sh, a)
                 for s, n, sh, a in zip(slabs, ns, shapes, alphas))


# One fused XLA program: keeps wrapper pad/reshape/slice ops co-scheduled with the kernels.
model_forward_jit = jax.jit(model_forward)


def _ref_forward(x, y, z, w):
    def elu(t, alpha):
        t = t * 2.0 - 1.0
        return jnp.where(t > 0.0, t, alpha * jnp.expm1(jnp.minimum(t, 0.0)))

    return (elu(x, 1.0), elu(y, 1.0), elu(z, 1.3), elu(w, 1.3))


if __name__ == "__main__":
    key = jax.random.PRNGKey(0)
    kx, ky, kz, kw = jax.random.split(key, 4)

    # Small shapes mirroring the pnnx test (rank 2/3/4/5 inputs) -> fused small path.
    x = jax.random.uniform(kx, (1, 12), dtype=jnp.float32)
    y = jax.random.uniform(ky, (1, 12, 24), dtype=jnp.float32)
    z = jax.random.uniform(kz, (1, 12, 24, 16), dtype=jnp.float32)
    w = jax.random.uniform(kw, (1, 12, 8, 8, 16), dtype=jnp.float32)

    outs = jax.block_until_ready(model_forward_jit(x, y, z, w))
    refs = _ref_forward(x, y, z, w)
    for o, r in zip(outs, refs):
        assert o.shape == r.shape and o.dtype == r.dtype
        assert float(jnp.max(jnp.abs(o - r))) < 1e-5

    # Also exercise the large per-tensor path (incl. the tiled streaming kernel) once.
    kx2, ky2, kz2, kw2 = jax.random.split(jax.random.PRNGKey(1), 4)
    x2 = jax.random.uniform(kx2, (4, 64), dtype=jnp.float32)
    y2 = jax.random.uniform(ky2, (2, 96, 128), dtype=jnp.float32)
    z2 = jax.random.uniform(kz2, (8, 256, 640), dtype=jnp.float32)     # -> tiled stream
    w2 = jax.random.uniform(kw2, (2, 12, 8, 8, 16), dtype=jnp.float32)

    outs2 = jax.block_until_ready(model_forward_jit(x2, y2, z2, w2))
    refs2 = _ref_forward(x2, y2, z2, w2)
    for o, r in zip(outs2, refs2):
        assert o.shape == r.shape and o.dtype == r.dtype
        assert float(jnp.max(jnp.abs(o - r))) < 1e-5

    print("KERNEL_OK")
</pallas_src>

<mosaic_0001>
module attributes {stable_mosaic.version = 11 : i64} {
  func.func @_fused_elu_kernel(%arg0: memref<8x128xf32, #tpu.memory_space<vmem>>, %arg1: memref<8x128xf32, #tpu.memory_space<vmem>>, %arg2: memref<40x128xf32, #tpu.memory_space<vmem>>, %arg3: memref<96x128xf32, #tpu.memory_space<vmem>>, %arg4: memref<8x128xf32, #tpu.memory_space<vmem>>, %arg5: memref<8x128xf32, #tpu.memory_space<vmem>>, %arg6: memref<40x128xf32, #tpu.memory_space<vmem>>, %arg7: memref<96x128xf32, #tpu.memory_space<vmem>>) attributes {dimension_semantics = [], scalar_prefetch = 0 : i64, scratch_operands = 0 : i64, tpu.core_type = #tpu.core_type<tc>} {
    %c0 = arith.constant 0 : index
    %c0_0 = arith.constant 0 : index
    %0 = vector.load %arg0[%c0, %c0_0] : memref<8x128xf32, #tpu.memory_space<vmem>>, vector<8x128xf32>
    %cst = arith.constant 2.000000e+00 : f32
    %1 = vector.broadcast %cst : f32 to vector<8x128xf32>
    %2 = arith.mulf %0, %1 : vector<8x128xf32>
    %cst_1 = arith.constant 1.000000e+00 : f32
    %3 = vector.broadcast %cst_1 : f32 to vector<8x128xf32>
    %4 = arith.subf %2, %3 : vector<8x128xf32>
    %cst_2 = arith.constant 0.000000e+00 : f32
    %5 = vector.broadcast %cst_2 : f32 to vector<8x128xf32>
    %6 = arith.minimumf %4, %5 : vector<8x128xf32>
    %7 = math.exp %6 : vector<8x128xf32>
    %cst_3 = arith.constant 1.000000e+00 : f32
    %8 = vector.broadcast %cst_3 : f32 to vector<8x128xf32>
    %9 = arith.subf %7, %8 : vector<8x128xf32>
    %cst_4 = arith.constant 1.000000e+00 : f32
    %10 = vector.broadcast %cst_4 : f32 to vector<8x128xf32>
    %11 = arith.mulf %10, %9 : vector<8x128xf32>
    %cst_5 = arith.constant 0.000000e+00 : f32
    %12 = vector.broadcast %cst_5 : f32 to vector<8x128xf32>
    %13 = arith.cmpf ogt, %4, %12 : vector<8x128xf32>
    %14 = arith.select %13, %4, %11 : vector<8x128xi1>, vector<8x128xf32>
    %c0_6 = arith.constant 0 : index
    %c0_7 = arith.constant 0 : index
    %15 = vector.load %arg4[%c0_6, %c0_7] : memref<8x128xf32, #tpu.memory_space<vmem>>, vector<8x128xf32>
    tpu.vector_store %arg4[%c0_6, %c0_7], %14 {strides = array<i32>} : memref<8x128xf32, #tpu.memory_space<vmem>>, vector<8x128xf32>,
    %c0_8 = arith.constant 0 : index
    %c0_9 = arith.constant 0 : index
    %16 = vector.load %arg1[%c0_8, %c0_9] : memref<8x128xf32, #tpu.memory_space<vmem>>, vector<8x128xf32>
    %cst_10 = arith.constant 2.000000e+00 : f32
    %17 = vector.broadcast %cst_10 : f32 to vector<8x128xf32>
    %18 = arith.mulf %16, %17 : vector<8x128xf32>
    %cst_11 = arith.constant 1.000000e+00 : f32
    %19 = vector.broadcast %cst_11 : f32 to vector<8x128xf32>
    %20 = arith.subf %18, %19 : vector<8x128xf32>
    %cst_12 = arith.constant 0.000000e+00 : f32
    %21 = vector.broadcast %cst_12 : f32 to vector<8x128xf32>
    %22 = arith.minimumf %20, %21 : vector<8x128xf32>
    %23 = math.exp %22 : vector<8x128xf32>
    %cst_13 = arith.constant 1.000000e+00 : f32
    %24 = vector.broadcast %cst_13 : f32 to vector<8x128xf32>
    %25 = arith.subf %23, %24 : vector<8x128xf32>
    %cst_14 = arith.constant 1.000000e+00 : f32
    %26 = vector.broadcast %cst_14 : f32 to vector<8x128xf32>
    %27 = arith.mulf %26, %25 : vector<8x128xf32>
    %cst_15 = arith.constant 0.000000e+00 : f32
    %28 = vector.broadcast %cst_15 : f32 to vector<8x128xf32>
    %29 = arith.cmpf ogt, %20, %28 : vector<8x128xf32>
    %30 = arith.select %29, %20, %27 : vector<8x128xi1>, vector<8x128xf32>
    %c0_16 = arith.constant 0 : index
    %c0_17 = arith.constant 0 : index
    %31 = vector.load %arg5[%c0_16, %c0_17] : memref<8x128xf32, #tpu.memory_space<vmem>>, vector<8x128xf32>
    tpu.vector_store %arg5[%c0_16, %c0_17], %30 {strides = array<i32>} : memref<8x128xf32, #tpu.memory_space<vmem>>, vector<8x128xf32>,
    %c0_18 = arith.constant 0 : index
    %c0_19 = arith.constant 0 : index
    %32 = vector.load %arg2[%c0_18, %c0_19] : memref<40x128xf32, #tpu.memory_space<vmem>>, vector<40x128xf32>
    %cst_20 = arith.constant 2.000000e+00 : f32
    %33 = vector.broadcast %cst_20 : f32 to vector<40x128xf32>
    %34 = arith.mulf %32, %33 : vector<40x128xf32>
    %cst_21 = arith.constant 1.000000e+00 : f32
    %35 = vector.broadcast %cst_21 : f32 to vector<40x128xf32>
    %36 = arith.subf %34, %35 : vector<40x128xf32>
    %cst_22 = arith.constant 0.000000e+00 : f32
    %37 = vector.broadcast %cst_22 : f32 to vector<40x128xf32>
    %38 = arith.minimumf %36, %37 : vector<40x128xf32>
    %39 = math.exp %38 : vector<40x128xf32>
    %cst_23 = arith.constant 1.000000e+00 : f32
    %40 = vector.broadcast %cst_23 : f32 to vector<40x128xf32>
    %41 = arith.subf %39, %40 : vector<40x128xf32>
    %cst_24 = arith.constant 1.300000e+00 : f32
    %42 = vector.broadcast %cst_24 : f32 to vector<40x128xf32>
    %43 = arith.mulf %42, %41 : vector<40x128xf32>
    %cst_25 = arith.constant 0.000000e+00 : f32
    %44 = vector.broadcast %cst_25 : f32 to vector<40x128xf32>
    %45 = arith.cmpf ogt, %36, %44 : vector<40x128xf32>
    %46 = arith.select %45, %36, %43 : vector<40x128xi1>, vector<40x128xf32>
    %c0_26 = arith.constant 0 : index
    %c0_27 = arith.constant 0 : index
    %47 = vector.load %arg6[%c0_26, %c0_27] : memref<40x128xf32, #tpu.memory_space<vmem>>, vector<40x128xf32>
    tpu.vector_store %arg6[%c0_26, %c0_27], %46 {strides = array<i32>} : memref<40x128xf32, #tpu.memory_space<vmem>>, vector<40x128xf32>,
    %c0_28 = arith.constant 0 : index
    %c0_29 = arith.constant 0 : index
    %48 = vector.load %arg3[%c0_28, %c0_29] : memref<96x128xf32, #tpu.memory_space<vmem>>, vector<96x128xf32>
    %cst_30 = arith.constant 2.000000e+00 : f32
    %49 = vector.broadcast %cst_30 : f32 to vector<96x128xf32>
    %50 = arith.mulf %48, %49 : vector<96x128xf32>
    %cst_31 = arith.constant 1.000000e+00 : f32
    %51 = vector.broadcast %cst_31 : f32 to vector<96x128xf32>
    %52 = arith.subf %50, %51 : vector<96x128xf32>
    %cst_32 = arith.constant 0.000000e+00 : f32
    %53 = vector.broadcast %cst_32 : f32 to vector<96x128xf32>
    %54 = arith.minimumf %52, %53 : vector<96x128xf32>
    %55 = math.exp %54 : vector<96x128xf32>
    %cst_33 = arith.constant 1.000000e+00 : f32
    %56 = vector.broadcast %cst_33 : f32 to vector<96x128xf32>
    %57 = arith.subf %55, %56 : vector<96x128xf32>
    %cst_34 = arith.constant 1.300000e+00 : f32
    %58 = vector.broadcast %cst_34 : f32 to vector<96x128xf32>
    %59 = arith.mulf %58, %57 : vector<96x128xf32>
    %cst_35 = arith.constant 0.000000e+00 : f32
    %60 = vector.broadcast %cst_35 : f32 to vector<96x128xf32>
    %61 = arith.cmpf ogt, %52, %60 : vector<96x128xf32>
    %62 = arith.select %61, %52, %59 : vector<96x128xi1>, vector<96x128xf32>
    %c0_36 = arith.constant 0 : index
    %c0_37 = arith.constant 0 : index
    %63 = vector.load %arg7[%c0_36, %c0_37] : memref<96x128xf32, #tpu.memory_space<vmem>>, vector<96x128xf32>
    tpu.vector_store %arg7[%c0_36, %c0_37], %62 {strides = array<i32>} : memref<96x128xf32, #tpu.memory_space<vmem>>, vector<96x128xf32>,
    return
  }
}

</mosaic_0001>

<bundles_post_ra>
// kernel: model_forward.1
= control target key start
LH: loop header
LB: loop body
LE: loop exit
PB: predicated region body
PF: predicated region fallthrough
CT: control target
= control target key end

     0   :  { %s579_s0 = inlined_call_operand.vmem [shape: f32[8,128], index: 0, kind: input, shape index: {}]   ;;  %s580_s1 = inlined_call_operand.vmem [shape: f32[8,128], index: 1, kind: input, shape index: {}]   ;;  %s581_s2 = inlined_call_operand.vmem [shape: f32[40,128], index: 2, kind: input, shape index: {}]   ;;  %s582_s3 = inlined_call_operand.vmem [shape: f32[96,128], index: 3, kind: input, shape index: {}]   ;;  %s583_s4 = inlined_call_operand.vmem [shape: f32[8,128], index: 4, kind: output, shape index: {0}]   ;;  %s584_s5 = inlined_call_operand.vmem [shape: f32[8,128], index: 5, kind: output, shape index: {1}]   ;;  %s585_s6 = inlined_call_operand.vmem [shape: f32[40,128], index: 6, kind: output, shape index: {2}]   ;;  %s586_s7 = inlined_call_operand.vmem [shape: f32[96,128], index: 7, kind: output, shape index: {3}]  }
   0x1   :  { %v21_v0 = vld [vmem:[%s579_s0] sm:$0xff]  ;;  %v42_v6 = vld [vmem:[%s581_s2 + $0x8] sm:$0xff]  ;;  %v43_v7 = vld [vmem:[%s581_s2 + $0x10] sm:$0xff] }
   0x2   :  { %v31_v1 = vld [vmem:[%s580_s1] sm:$0xff]  ;;  %v22_v3 = vmul.f32 2.0, %v21_v0  ;;  %v44_v8 = vld [vmem:[%s581_s2 + $0x18] sm:$0xff]  ;;  %v47_v9 = vmul.f32 2.0, %v42_v6  ;;  %v48_v10 = vmul.f32 2.0, %v43_v7  ;;  %v97_v26 = vld [vmem:[%s582_s3 + $0x8] sm:$0xff] }
   0x3   :  { %v41_v2 = vld [vmem:[%s581_s2] sm:$0xff]  ;;  %v32_v4 = vmul.f32 2.0, %v31_v1  ;;  %v49_v11 = vmul.f32 2.0, %v44_v8  ;;  %v98_v30 = vld [vmem:[%s582_s3 + $0x10] sm:$0xff]  ;;  %v109_v38 = vmul.f32 2.0, %v97_v26  ;;  %v99_v40 = vld [vmem:[%s582_s3 + $0x18] sm:$0xff] }
   0x4   :  { %v46_v5 = vmul.f32 2.0, %v41_v2  ;;  %v45_v12 = vld [vmem:[%s581_s2 + $0x20] sm:$0xff]  ;;  %v384_v14 = vadd.f32 -1.0, %v22_v3  ;;  %v390_v17 = vadd.f32 -1.0, %v47_v9  ;;  %v392_v18 = vadd.f32 -1.0, %v48_v10  ;;  %v101_v49 = vld [vmem:[%s582_s3 + $0x28] sm:$0xff] }
   0x5   :  { %v96_v13 = vld [vmem:[%s582_s3] sm:$0xff]  ;;  %v386_v15 = vadd.f32 -1.0, %v32_v4  ;;  %v394_v19 = vadd.f32 -1.0, %v49_v11  ;;  %v50_v22 = vmul.f32 2.0, %v45_v12  ;;  %v110_v39 = vmul.f32 2.0, %v98_v30  ;;  %v102_v52 = vld [vmem:[%s582_s3 + $0x30] sm:$0xff] }
   0x6   :  { %v388_v16 = vadd.f32 -1.0, %v46_v5  ;;  %v24_v20 = vmin.f32 %v384_v14, 0.0  ;;  %v108_v23 = vmul.f32 2.0, %v96_v13  ;;  %v57_v25 = vmin.f32 %v390_v17, 0.0  ;;  %v100_v45 = vld [vmem:[%s582_s3 + $0x20] sm:$0xff]  ;;  %v103_v55 = vld [vmem:[%s582_s3 + $0x38] sm:$0xff] }
   0x7   :  { %v34_v21 = vmin.f32 %v386_v15, 0.0  ;;  %v58_v29 = vmin.f32 %v392_v18, 0.0  ;;  %v59_v33 = vmin.f32 %v394_v19, 0.0  ;;  %v408_v35 = vadd.f32 -1.0, %v50_v22  ;;  %v104_v7 = vld [vmem:[%s582_s3 + $0x40] sm:$0xff] }
   0x8   :  { %v56_v24 = vmin.f32 %v388_v16, 0.0  ;;  %v25_v27 = vmul.f32 1.442695, %v24_v20  ;;  %v63_v32 = vmul.f32 1.442695, %v57_v25  ;;  %v410_v36 = vadd.f32 -1.0, %v108_v23 }
   0x9   :  { %v35_v28 = vmul.f32 1.442695, %v34_v21  ;;  %v65_v34 = vmul.f32 1.442695, %v58_v29  ;;  %v67_v37 = vmul.f32 1.442695, %v59_v33 }
   0xa   :  { %v61_v31 = vmul.f32 1.442695, %v56_v24  ;;  %282 = vpow2.f32 %v25_v27  ;;  %v60_v41 = vmin.f32 %v408_v35, 0.0  ;;  %v132_v42 = vmin.f32 %v410_v36, 0.0 }
   0xb   :  { %284 = vpow2.f32 %v35_v28  ;;  %vm28_vm0 = vcmp.gt.f32.partialorder %v384_v14, 0.0  ;;  %v418_v43 = vadd.f32 -1.0, %v109_v38  ;;  %v420_v44 = vadd.f32 -1.0, %v110_v39 }
   0xc   :  { %286 = vpow2.f32 %v61_v31  ;;  %v69_v46 = vmul.f32 1.442695, %v60_v41  ;;  %v144_v47 = vmul.f32 1.442695, %v132_v42  ;;  %v111_v48 = vmul.f32 2.0, %v99_v40 }
   0xd   :  { %288 = vpow2.f32 %v63_v32  ;;  %vm38_vm1 = vcmp.gt.f32.partialorder %v386_v15, 0.0  ;;  %v133_v50 = vmin.f32 %v418_v43, 0.0  ;;  %v134_v51 = vmin.f32 %v420_v44, 0.0 }
   0xe   :  { %290 = vpow2.f32 %v65_v34  ;;  %vm81_vm2 = vcmp.gt.f32.partialorder %v388_v16, 0.0  ;;  %v435_v53 = vadd.f32 -1.0, %v111_v48  ;;  %v112_v54 = vmul.f32 2.0, %v100_v45 }
   0xf   :  { %292 = vpow2.f32 %v67_v37  ;;  %vm82_vm3 = vcmp.gt.f32.partialorder %v390_v17, 0.0  ;;  %v146_v56 = vmul.f32 1.442695, %v133_v50  ;;  %v148_v57 = vmul.f32 1.442695, %v134_v51 }
  0x10   :  { %294 = vpow2.f32 %v69_v46  ;;  %v113_v58 = vmul.f32 2.0, %v101_v49  ;;  %vm83_vm4 = vcmp.gt.f32.partialorder %v392_v18, 0.0  ;;  %v135_v59 = vmin.f32 %v435_v53, 0.0 }
  0x11   :  { %296 = vpow2.f32 %v144_v47  ;;  %v443_v60 = vadd.f32 -1.0, %v112_v54  ;;  %v114_v61 = vmul.f32 2.0, %v102_v52  ;;  %vm84_vm5 = vcmp.gt.f32.partialorder %v394_v19, 0.0 }
  0x12   :  { %298 = vpow2.f32 %v146_v56  ;;  %v446_v62 = vadd.f32 -1.0, %v113_v58  ;;  %v115_v63 = vmul.f32 2.0, %v103_v55  ;;  %vm85_vm6 = vcmp.gt.f32.partialorder %v408_v35, 0.0 }
  0x13   :  { %300 = vpow2.f32 %v148_v57  ;;  %v150_v1 = vmul.f32 1.442695, %v135_v59  ;;  %v136_v2 = vmin.f32 %v443_v60, 0.0  ;;  %vm192_vm7 = vcmp.gt.f32.partialorder %v410_v36, 0.0 }
  0x14   :  { %v283_v0 = vpop.eup %282  ;;  %v137_v5 = vmin.f32 %v446_v62, 0.0  ;;  %v452_v6 = vadd.f32 -1.0, %v114_v61  ;;  %v457_v11 = vadd.f32 -1.0, %v115_v63  ;;  %v116_v26 = vmul.f32 2.0, %v104_v7 }
  0x15   :  { %v285_v3 = vpop.eup %284  ;;  %v245_v4 = vadd.f32 -1.0, %v283_v0  ;;  %302 = vpow2.f32 %v150_v1  ;;  %v152_v10 = vmul.f32 1.442695, %v136_v2  ;;  %vm193_vm8 = vcmp.gt.f32.partialorder %v418_v43, 0.0 }
  0x16   :  { %v287_v8 = vpop.eup %286  ;;  %v247_v9 = vadd.f32 -1.0, %v285_v3  ;;  %v154_v21 = vmul.f32 1.442695, %v137_v5  ;;  %v138_v22 = vmin.f32 %v452_v6, 0.0  ;;  %v139_v33 = vmin.f32 %v457_v11, 0.0 }
  0x17   :  { %v289_v12 = vpop.eup %288  ;;  %v29_v13 = vsel %vm28_vm0, %v384_v14, %v245_v4  ;;  %v253_v20 = vadd.f32 -1.0, %v287_v8  ;;  %304 = vpow2.f32 %v152_v10  ;;  %v492_v48 = vadd.f32 -1.0, %v116_v26 }
  0x18   :  { %v291_v23 = vpop.eup %290  ;;  %30 = vst [vmem:[%s583_s4] sm:$0xff] %v29_v13  ;;  %v39_v24 = vsel %vm38_vm1, %v386_v15, %v247_v9  ;;  %v254_v25 = vadd.f32 -1.0, %v289_v12  ;;  %306 = vpow2.f32 %v154_v21  ;;  %v156_v29 = vmul.f32 1.442695, %v138_v22  ;;  %v105_v15 = vld [vmem:[%s582_s3 + $0x48] sm:$0xff] }
  0x19   :  { %v293_v27 = vpop.eup %292  ;;  %40 = vst [vmem:[%s584_s5] sm:$0xff] %v39_v24  ;;  %v76_v14 = vmul.f32 1.3, %v253_v20  ;;  %v255_v28 = vadd.f32 -1.0, %v291_v23  ;;  %v158_v45 = vmul.f32 1.442695, %v139_v33  ;;  %v117_v49 = vmul.f32 2.0, %v105_v15 }
  0x1a   :  { %v295_v30 = vpop.eup %294  ;;  %v77_v31 = vmul.f32 1.3, %v254_v25  ;;  %v256_v32 = vadd.f32 -1.0, %v293_v27  ;;  %308 = vpow2.f32 %v156_v29  ;;  %vm194_vm9 = vcmp.gt.f32.partialorder %v420_v44, 0.0 }
  0x1b   :  { %v297_v34 = vpop.eup %296  ;;  %v86_v37 = vsel %vm81_vm2, %v388_v16, %v76_v14  ;;  %v78_v38 = vmul.f32 1.3, %v255_v28  ;;  %v257_v39 = vadd.f32 -1.0, %v295_v30  ;;  %310 = vpow2.f32 %v158_v45 }
  0x1c   :  { %91 = vst [vmem:[%s585_s6] sm:$0xff] %v86_v37  ;;  %v87_v40 = vsel %vm82_vm3, %v390_v17, %v77_v31  ;;  %v79_v41 = vmul.f32 1.3, %v256_v32  ;;  %v270_v42 = vadd.f32 -1.0, %v297_v34  ;;  %v299_v46 = vpop.eup %298  ;;  %v106_v17 = vld [vmem:[%s582_s3 + $0x50] sm:$0xff]  ;;  %v520_v61 = vadd.f32 -1.0, %v117_v49 }
  0x1d   :  { %92 = vst [vmem:[%s585_s6 + $0x8] sm:$0xff] %v87_v40  ;;  %v88_v16 = vsel %vm83_vm4, %v392_v18, %v78_v38  ;;  %v80_v47 = vmul.f32 1.3, %v257_v39  ;;  %v301_v50 = vpop.eup %300  ;;  %v271_v54 = vadd.f32 -1.0, %v299_v46  ;;  %v107_v18 = vld [vmem:[%s582_s3 + $0x58] sm:$0xff]  ;;  %v118_v63 = vmul.f32 2.0, %v106_v17 }
  0x1e   :  { %93 = vst [vmem:[%s585_s6 + $0x10] sm:$0xff] %v88_v16  ;;  %v89_v51 = vsel %vm84_vm5, %v394_v19, %v79_v41  ;;  %v180_v52 = vmul.f32 1.3, %v270_v42  ;;  %v272_v56 = vadd.f32 -1.0, %v301_v50  ;;  %v140_v19 = vmin.f32 %v492_v48, 0.0 }
  0x1f   :  { %94 = vst [vmem:[%s585_s6 + $0x18] sm:$0xff] %v89_v51  ;;  %v90_v55 = vsel %vm85_vm6, %v408_v35, %v80_v47  ;;  %v303_v57 = vpop.eup %302  ;;  %v181_v59 = vmul.f32 1.3, %v271_v54  ;;  %v119_v2 = vmul.f32 2.0, %v107_v18  ;;  %vm195_vm10 = vcmp.gt.f32.partialorder %v435_v53, 0.0 }
  0x20   :  { %95 = vst [vmem:[%s585_s6 + $0x20] sm:$0xff] %v90_v55  ;;  %v204_v58 = vsel %vm192_vm7, %v410_v36, %v180_v52  ;;  %v182_v35 = vmul.f32 1.3, %v272_v56  ;;  %v273_v0 = vadd.f32 -1.0, %v303_v57  ;;  %v160_v1 = vmul.f32 1.442695, %v140_v19 }
  0x21   :  { %216 = vst [vmem:[%s586_s7] sm:$0xff] %v204_v58  ;;  %v305_v3 = vpop.eup %304  ;;  %v205_v4 = vsel %vm193_vm8, %v418_v43, %v181_v59  ;;  %v141_v36 = vmin.f32 %v520_v61, 0.0  ;;  %v268_v5 = vadd.f32 -1.0, %v118_v63  ;;  %vm196_vm11 = vcmp.gt.f32.partialorder %v443_v60, 0.0 }
  0x22   :  { %v307_v7 = vpop.eup %306  ;;  %217 = vst [vmem:[%s586_s7 + $0x8] sm:$0xff] %v205_v4  ;;  %v206_v8 = vsel %vm194_vm9, %v420_v44, %v182_v35  ;;  %v183_v9 = vmul.f32 1.3, %v273_v0  ;;  %v274_v10 = vadd.f32 -1.0, %v305_v3  ;;  %312 = vpow2.f32 %v160_v1 }
  0x23   :  { %218 = vst [vmem:[%s586_s7 + $0x10] sm:$0xff] %v206_v8  ;;  %v275_v43 = vadd.f32 -1.0, %v307_v7  ;;  %v162_v12 = vmul.f32 1.442695, %v141_v36  ;;  %v142_v13 = vmin.f32 %v268_v5, 0.0  ;;  %vm197_vm12 = vcmp.gt.f32.partialorder %v446_v62, 0.0 }
  0x24   :  { %v309_v20 = vpop.eup %308  ;;  %v207_v21 = vsel %vm195_vm10, %v435_v53, %v183_v9  ;;  %v184_v22 = vmul.f32 1.3, %v274_v10  ;;  %v269_v23 = vadd.f32 -1.0, %v119_v2  ;;  %vm198_vm13 = vcmp.gt.f32.partialorder %v452_v6, 0.0 }
  0x25   :  { %219 = vst [vmem:[%s586_s7 + $0x18] sm:$0xff] %v207_v21  ;;  %v185_v44 = vmul.f32 1.3, %v275_v43  ;;  %v276_v24 = vadd.f32 -1.0, %v309_v20  ;;  %314 = vpow2.f32 %v162_v12  ;;  %v164_v25 = vmul.f32 1.442695, %v142_v13  ;;  %v311_v14 = vpop.eup %310 }
  0x26   :  { %v208_v26 = vsel %vm196_vm11, %v443_v60, %v184_v22  ;;  %v143_v27 = vmin.f32 %v269_v23, 0.0  ;;  %v277_v29 = vadd.f32 -1.0, %v311_v14  ;;  %vm199_vm14 = vcmp.gt.f32.partialorder %v457_v11, 0.0 }
  0x27   :  { %220 = vst [vmem:[%s586_s7 + $0x20] sm:$0xff] %v208_v26  ;;  %v209_v53 = vsel %vm197_vm12, %v446_v62, %v185_v44  ;;  %v186_v28 = vmul.f32 1.3, %v276_v24  ;;  %316 = vpow2.f32 %v164_v25  ;;  %vm200_vm15 = vcmp.gt.f32.partialorder %v492_v48, 0.0 }
  0x28   :  { %221 = vst [vmem:[%s586_s7 + $0x28] sm:$0xff] %v209_v53  ;;  %v166_v30 = vmul.f32 1.442695, %v143_v27  ;;  %v187_v31 = vmul.f32 1.3, %v277_v29  ;;  %vm201_vm0 = vcmp.gt.f32.partialorder %v520_v61, 0.0 }
  0x29   :  { %v210_v60 = vsel %vm198_vm13, %v452_v6, %v186_v28  ;;  %vm202_vm1 = vcmp.gt.f32.partialorder %v268_v5, 0.0  ;;  %vm203_vm2 = vcmp.gt.f32.partialorder %v269_v23, 0.0 }
  0x2a   :  { %222 = vst [vmem:[%s586_s7 + $0x30] sm:$0xff] %v210_v60  ;;  %318 = vpow2.f32 %v166_v30  ;;  %v211_v62 = vsel %vm199_vm14, %v457_v11, %v187_v31 }
  0x2b   :  { %223 = vst [vmem:[%s586_s7 + $0x38] sm:$0xff] %v211_v62 }
  0x2c   :  { %v313_v32 = vpop.eup %312 }
  0x2d   :  { %v278_v33 = vadd.f32 -1.0, %v313_v32 }
  0x2f   :  { %v315_v15 = vpop.eup %314  ;;  %v188_v6 = vmul.f32 1.3, %v278_v33 }
  0x30   :  { %v279_v34 = vadd.f32 -1.0, %v315_v15 }
  0x31   :  { %v317_v37 = vpop.eup %316  ;;  %v212_v38 = vsel %vm200_vm15, %v492_v48, %v188_v6 }
  0x32   :  { %224 = vst [vmem:[%s586_s7 + $0x40] sm:$0xff] %v212_v38  ;;  %v189_v11 = vmul.f32 1.3, %v279_v34  ;;  %v280_v39 = vadd.f32 -1.0, %v317_v37 }
  0x34   :  { %v319_v40 = vpop.eup %318  ;;  %v213_v41 = vsel %vm201_vm0, %v520_v61, %v189_v11  ;;  %v190_v42 = vmul.f32 1.3, %v280_v39 }
  0x35   :  { %225 = vst [vmem:[%s586_s7 + $0x48] sm:$0xff] %v213_v41  ;;  %v281_v45 = vadd.f32 -1.0, %v319_v40 }
  0x36   :  { %v214_v46 = vsel %vm202_vm1, %v268_v5, %v190_v42 }
  0x37   :  { %226 = vst [vmem:[%s586_s7 + $0x50] sm:$0xff] %v214_v46  ;;  %v191_v16 = vmul.f32 1.3, %v281_v45 }
  0x39   :  { %v215_v47 = vsel %vm203_vm2, %v269_v23, %v191_v16 }
  0x3a   :  { %227 = vst [vmem:[%s586_s7 + $0x58] sm:$0xff] %v215_v47 }

</bundles_post_ra>
